<compile_context>
chip_gen: v6e
topology: v6e:2x2x1
jax: 0.10.0
libtpu: 0.0.40
codegen_flags: <defaults>
</compile_context>

<pallas_src>
import functools
import math

import jax
import jax.numpy as jnp
from jax.experimental import pallas as pl
from jax.experimental.pallas import tpu as pltpu


def _posenc_kernel(x_ref, emb_ref, o_ref, *, batch):
    # x_ref / o_ref: (ts, B*N) lane-dense tiles of the flattened input/output.
    # emb_ref:       (ts, N)   pre-scaled position-embedding rows of this tile.
    pos = emb_ref[...]
    if batch > 1:
        # Broadcast over the batch axis = lane-axis tiling of a small operand
        # (no per-tile cross-sublane shuffles like the old pos[:, None, :]).
        pos = jnp.concatenate([pos] * batch, axis=-1)        # (ts, B*N)
    o_ref[...] = x_ref[...] + pos                            # pure VPU add


def _pick_tile_rows(S, x_row_bytes, emb_row_bytes, *,
                    vmem_budget_bytes=40 * 1024 * 1024, min_grid_steps=2):
    """Largest row tile (multiple of 8) whose double-buffered footprint fits
    the VMEM budget while keeping >= min_grid_steps grid steps when S allows
    it (so v7x's two TensorCores can split the parallel axis)."""
    if S <= 8:
        return S
    # resident footprint per row ~ 2*(x tile) + 2*(out tile) + 2*(emb tile)
    bytes_per_row = 4 * x_row_bytes + 2 * emb_row_bytes
    ts = max(8, int(vmem_budget_bytes // bytes_per_row))
    if S >= 2 * 8:
        ts = min(ts, max(8, S // min_grid_steps))
    ts = min(ts, S)
    return max(8, (ts // 8) * 8)


def position_encode(x, emb_table):
    """out[s, b, :] = x[s, b, :] + emb_table[s, :] / sqrt(nmem)."""
    S, B, N = x.shape
    len_max, n2 = emb_table.shape
    assert n2 == N and S <= len_max

    # Hoist scale + cast out of the kernel: one tiny (S, N) pass, reused by
    # every grid step.
    inv_sqrt = 1.0 / math.sqrt(N)
    emb = (emb_table[:S].astype(jnp.float32) * inv_sqrt).astype(x.dtype)

    # Lane-dense 2-D view; (S, B, N) -> (S, B*N) is a free row-major reshape.
    x2 = x.reshape(S, B * N)

    dt_bytes = jnp.dtype(x.dtype).itemsize
    emb_bytes = jnp.dtype(emb.dtype).itemsize
    ts = _pick_tile_rows(S, B * N * dt_bytes, N * emb_bytes)
    grid = (pl.cdiv(S, ts),)

    out2 = pl.pallas_call(
        functools.partial(_posenc_kernel, batch=B),
        out_shape=jax.ShapeDtypeStruct((S, B * N), x.dtype),
        grid_spec=pl.GridSpec(
            grid=grid,
            in_specs=[
                pl.BlockSpec((ts, B * N), lambda i: (i, 0)),   # x rows
                pl.BlockSpec((ts, N), lambda i: (i, 0)),       # emb rows
            ],
            out_specs=pl.BlockSpec((ts, B * N), lambda i: (i, 0)),
        ),
        compiler_params=pltpu.CompilerParams(
            dimension_semantics=("parallel",),          # shards across v7x's 2 TCs
            vmem_limit_bytes=48 * 1024 * 1024,          # > 32 MiB scoped default,
        ),                                              # < 64 MiB v7x physical
    )(x2, emb)

    return out2.reshape(S, B, N)


if __name__ == "__main__":
    # Small shapes consistent with the module: seq=16, batch=2, nmem=32, len_max=32.
    S, B, NMEM, LEN_MAX = 16, 2, 32, 32

    key = jax.random.PRNGKey(0)
    kx, kemb = jax.random.split(key)

    x = jax.random.normal(kx, (S, B, NMEM), dtype=jnp.float32)
    # Deterministic "nn.Embedding" weight init (N(0,1), like PyTorch default).
    emb_table = jax.random.normal(kemb, (LEN_MAX, NMEM), dtype=jnp.float32)

    out = jax.block_until_ready(position_encode(x, emb_table))

    # Pure-JAX reference.
    ref = x + (emb_table[:S] / math.sqrt(NMEM))[:, None, :]
    assert out.shape == (S, B, NMEM)
    assert jnp.allclose(out, ref, atol=1e-5, rtol=1e-5), "mismatch vs reference"

    print("KERNEL_OK")
</pallas_src>

<mosaic_0001>
module attributes {stable_mosaic.version = 11 : i64} {
  func.func @_posenc_kernel(%arg0: i32, %arg1: memref<8x64xf32, #tpu.memory_space<vmem>>, %arg2: memref<8x32xf32, #tpu.memory_space<vmem>>, %arg3: memref<8x64xf32, #tpu.memory_space<vmem>>) attributes {dimension_semantics = [#tpu.dimension_semantics<parallel>], iteration_bounds = array<i64: 2>, scalar_prefetch = 0 : i64, scratch_operands = 0 : i64, tpu.core_type = #tpu.core_type<tc>, window_params = [{transform_indices = @transform_0, window_bounds = array<i64: 8, 64>}, {transform_indices = @transform_1, window_bounds = array<i64: 8, 32>}, {transform_indices = @transform_2, window_bounds = array<i64: 8, 64>}]} {
    %c0 = arith.constant 0 : index
    %c0_0 = arith.constant 0 : index
    %0 = vector.load %arg2[%c0, %c0_0] : memref<8x32xf32, #tpu.memory_space<vmem>>, vector<8x32xf32>
    %1 = tpu.concatenate %0, %0 in 1 : vector<8x32xf32>, vector<8x32xf32> -> vector<8x64xf32>
    %c0_1 = arith.constant 0 : index
    %c0_2 = arith.constant 0 : index
    %2 = vector.load %arg1[%c0_1, %c0_2] : memref<8x64xf32, #tpu.memory_space<vmem>>, vector<8x64xf32>
    %3 = arith.addf %2, %1 : vector<8x64xf32>
    %c0_3 = arith.constant 0 : index
    %c0_4 = arith.constant 0 : index
    %4 = vector.load %arg3[%c0_3, %c0_4] : memref<8x64xf32, #tpu.memory_space<vmem>>, vector<8x64xf32>
    tpu.vector_store %arg3[%c0_3, %c0_4], %3 {strides = array<i32>} : memref<8x64xf32, #tpu.memory_space<vmem>>, vector<8x64xf32>,
    return
  }
  func.func @transform_0(%arg0: i32) -> (i32, i32) {
    %c0_i32 = arith.constant 0 : i32
    %c0_i32_0 = arith.constant 0 : i32
    return %arg0, %c0_i32 : i32, i32
  }
  func.func @transform_1(%arg0: i32) -> (i32, i32) {
    %c0_i32 = arith.constant 0 : i32
    %c0_i32_0 = arith.constant 0 : i32
    return %arg0, %c0_i32 : i32, i32
  }
  func.func @transform_2(%arg0: i32) -> (i32, i32) {
    %c0_i32 = arith.constant 0 : i32
    %c0_i32_0 = arith.constant 0 : i32
    return %arg0, %c0_i32 : i32, i32
  }
}

</mosaic_0001>

<bundles_post_ra>
// kernel: tpu_custom_call.1
= control target key start
LH: loop header
LB: loop body
LE: loop exit
PB: predicated region body
PF: predicated region fallthrough
CT: control target
= control target key end

     0   :  { %7 = vsyncpa [#allocation3], 0  ;;  %s720_s0 = inlined_call_operand.hbm [shape: f32[16,64], index: 0, kind: input, shape index: {}]   ;;  %s721_s1 = inlined_call_operand.hbm [shape: f32[16,32], index: 1, kind: input, shape index: {}]   ;;  %s722_s2 = inlined_call_operand.hbm [shape: f32[16,64], index: 2, kind: output, shape index: {}]  }
   0x1   :  { %9 = vsyncpa [#allocation3 + $0x1], 0 }
   0x2   :  { %10 = vsyncpa [#allocation6], 0 }
   0x3   :  { %12 = vsyncpa [#allocation6 + $0x1], 0 }
   0x4   :  { %13 = vsyncpa [#allocation4], 0 }
   0x5   :  { %15 = vsyncpa [#allocation4 + $0x1], 0  ;;  %s526_s9 = smov 0   ;;  %s528_s10 = smov 0  }
   0x6   :  { %s530_s11 = smov 0   ;;  %s532_s12 = smov 0  }
   0x7 LB: > { %s547_s13 = sadd.s32 4294967295, %s505_s12   ;;  %s314_s14 = sadd.s32 4294967294, %s505_s12   ;;  %s505_s12 = sphi %s532_s12, %s741_s12   ;;  %s501_s11 = sphi %s530_s11, %s740_s11   ;;  %s497_s10 = sphi %s528_s10, %s739_s10   ;;  %s493_s9 = sphi %s526_s9, %s738_s9  }
   0x8   : > { %s551_s15 = sadd.s32 1, %s505_s12   ;;  %s28_s16 = sadd.s32 1, %s501_s11 }
   0x9   : > { %s25_s17 = ssub.s32 %s505_s12, %s551_s15  ;;  %p35_p0 = scmp.ne.s32.totalorder %s501_s11, %s497_s10 }
   0xa   : > { %p26_p1 = scmp.eq.s32.totalorder %s25_s17, 0  ;;  %p36_p2 = scmp.eq.s32.totalorder %s505_s12, 0 }
   0xb   : > { %p41_p3 = scmp.ne.s32.totalorder %s497_s10, %s493_s9  ;;  %p42_p4 = scmp.eq.s32.totalorder %s547_s13, 0 }
   0xc   : > { %s563_s18 = scalar_select %p26_p1, %s501_s11, %s28_s16  }
   0xd   : > { %p565_p5 = por %p36_p2, %p35_p0  ;;  %p569_p6 = por %p42_p4, %p41_p3 }
   0xe   : > { %p91_p7 = scmp.eq.s32.totalorder %s547_s13, 1  ;;  %p97_p8 = scmp.eq.s32.totalorder %s314_s14, 1 }
   0xf   : > { %s726_s20 = scalar_select %p569_p6, 1, 0 }
  0x10   : > { %p346_p10 = scmp.lt.s32.totalorder %s505_s12, 2  ;;  %p576_p11 = por %p91_p7, %p35_p0 }
  0x11   : > { %p580_p12 = por %p97_p8, %p41_p3  ;;  %s585_s23 = sand.u32 1, %s501_s11  }
  0x12   : > { %s727_s21 = scalar_select %p576_p11, 1, 0 }
  0x13   : > { %s728_s22 = scalar_select %p580_p12, 1, 0 }
  0x14   : > { %s318_s24 = sshll.u32 %s505_s12, 7  ;;  %s317_s25 = sshll.u32 %s585_s23, 3 }
  0x15   : > { %s594_s28 = scalar_lea.hbm %s720_s0, %s318_s24  ;;  %s121_s29 = scalar_lea.vmem [#allocation2], %s317_s25 }
  0x16   : > { %s128_s30 = sshll.u32 %s121_s29, 4  ;;  %p600_p13 = pnand %p346_p10, %p565_p5  ;;  %s604_s30 = int_to_ptr.vmem [resolvable:$true] %s128_s30 }
  0x17   : > { %s118_s4 = scalar_lea.sflag [#allocation3], %s585_s23  ;;  %s381_s5 = scalar_lea.hbm %s594_s28, 128 }
  0x18   : > { %p382_p2 = scmp.ne.s32.totalorder %s594_s28, %s381_s5  ;;  %p383_p3 = pneg %p600_p13 }
  0x19   : > { %s386_s8 = scalar_lea.hbm %s720_s0, 256  ;;  %p387_p5 = scmp.lt.s32.totalorder %s594_s28, %s720_s0 }
  0x1a   : > { %p384_p4 = pnand %p383_p3, %p382_p2  ;;  %p388_p8 = scmp.lt.s32.totalorder %s386_s8, %s381_s5 }
  0x1c   : > { %p385_p7 = pneg %p384_p4  ;;  %p389_p10 = por %p388_p8, %p387_p5 }
  0x1e   : > { %p390_p9 = pnand %p389_p10, %p385_p7 }
  0x20   : > { %393 = shalt.err (!%p390_p9)
}
  0x21   : > { %s394_s17 = scalar_lea.vmem %s604_s30, 128  ;;  %s507_s19 = smov [#allocation2]  }
  0x22   : > { %p395_p0 = scmp.ne.s32.totalorder %s604_s30, %s394_s17  ;;  %s399_s26 = sshll.u32 %s507_s19, 4  ;;  %s400_s26 = int_to_ptr.vmem [resolvable:$false] %s399_s26 }
  0x23   : > { %s401_s27 = scalar_lea.vmem %s400_s26, 256  ;;  %p402_p1 = scmp.lt.s32.totalorder %s604_s30, %s400_s26 }
  0x24   : > { %p397_p2 = pnand %p395_p0, %p383_p3  ;;  %p403_p12 = scmp.lt.s32.totalorder %s401_s27, %s394_s17 }
  0x26   : > { %p398_p4 = pneg %p397_p2  ;;  %p404_p11 = por %p403_p12, %p402_p1 }
  0x28   : > { %p405_p5 = pnand %p404_p11, %p398_p4 }
  0x2a   : > { %408 = shalt.err (!%p405_p5)
}
  0x2b   : > { %338 = dma.hbm_to_vmem [thread:$0]  (!%p600_p13), %s594_s28, 128, %s604_s30, %s118_s4  }
  0x2c   : > { %p730_p9 = scmp.lt.s32.totalorder %s505_s12, 3  ;;  %p731_p0 = scmp.ge.s32.totalorder %s505_s12, 1 }
  0x2d   : > { %s646_s7 = scalar_lea.hbm %s721_s1, %s318_s24  ;;  %s139_s8 = scalar_lea.vmem [#allocation5], %s317_s25 }
  0x2e   : > { %p637_p7 = pnand %p731_p0, %p730_p9  ;;  %s146_s14 = sshll.u32 %s139_s8, 4  ;;  %s147_s14 = int_to_ptr.vmem [resolvable:$true] %s146_s14 }
  0x2f   : > { %s136_s28 = scalar_lea.sflag [#allocation6], %s585_s23  ;;  %s409_s30 = scalar_lea.hbm %s646_s7, 128 }
  0x30   : > { %s732_s29 = scalar_select %p637_p7, 1, 0 }
  0x31   : > { %p410_p11 = scmp.ne.s32.totalorder %s646_s7, %s409_s30  ;;  %s414_s17 = scalar_lea.hbm %s721_s1, 256 }
  0x32   : > { %p415_p8 = scmp.lt.s32.totalorder %s646_s7, %s721_s1  ;;  %p416_p10 = scmp.lt.s32.totalorder %s414_s17, %s409_s30 }
  0x33   : > { %p412_p12 = pnand %p410_p11, %p383_p3 }
  0x34   : > { %p417_p2 = por %p416_p10, %p415_p8 }
  0x35   : > { %p413_p1 = pneg %p412_p12 }
  0x37   : > { %p418_p4 = pnand %p417_p2, %p413_p1 }
  0x39   : > { %421 = shalt.err (!%p418_p4)
}
  0x3a   : > { %s422_s25 = scalar_lea.vmem %s147_s14, 128  ;;  %s508_s23 = smov [#allocation5]  }
  0x3b   : > { %p423_p5 = scmp.ne.s32.totalorder %s147_s14, %s422_s25  ;;  %s427_s26 = sshll.u32 %s508_s23, 4  ;;  %s428_s26 = int_to_ptr.vmem [resolvable:$false] %s427_s26 }
  0x3c   : > { %s429_s27 = scalar_lea.vmem %s428_s26, 256  ;;  %p430_p11 = scmp.lt.s32.totalorder %s147_s14, %s428_s26 }
  0x3d   : > { %p425_p9 = pnand %p423_p5, %p383_p3  ;;  %p431_p12 = scmp.lt.s32.totalorder %s429_s27, %s422_s25 }
  0x3f   : > { %p426_p0 = pneg %p425_p9  ;;  %p432_p6 = por %p431_p12, %p430_p11 }
  0x41   : > { %p433_p7 = pnand %p432_p6, %p426_p0 }
  0x43   : > { %436 = shalt.err (!%p433_p7)
}
  0x44   : > { %341 = dma.hbm_to_vmem [thread:$0]  (!%p600_p13), %s646_s7, 128, %s147_s14, %s136_s28  }
  0x45   : > { %p733_p1 = scmp.ne.s32.totalorder %s732_s29, 0 }
  0x46   : > { %s672_s5 = sand.u32 (!%p733_p1), 1, %s497_s10   ;;  %p734_p3 = scmp.ne.s32.totalorder (!%p733_p1), %s726_s20, 0 }
  0x47   : > { %155 = sbr.rel (%p733_p1) target bundleno = 211 (0xd3), region = 28  ;;  %s322_s6 = sshll.u32 (!%p733_p1), %s672_s5, 3 }
  0x48   : > { %s158_s8 = scalar_lea.sflag (!%p733_p1), [#allocation3], %s672_s5  ;;  %s161_s30 = scalar_lea.vmem (!%p733_p1), [#allocation2], %s322_s6 }
  0x4c   : > { %480 = dma.done.wait (%p734_p3), %s158_s8, 128  }
  0x4d   : > { %482 = vsyncadd (%p734_p3), %s158_s8, 4294967168  ;;  %s167_s3 = scalar_lea.sflag [#allocation6], %s672_s5  ;;  %s170_s7 = scalar_lea.vmem [#allocation5], %s322_s6 }
  0x4e   : > { %484 = dma.done.wait (%p734_p3), %s167_s3, 128  }
  0x4f   : > { %486 = vsyncadd (%p734_p3), %s167_s3, 4294967168  ;;  %v196_v0 = vld [vmem:[%s170_s7] sm:$0xff]  ;;  %s509_s29 = smov 32   ;;  %vm201_vm0 = vcmask 261120   ;;  %v203_v1 = vld [vmem:[%s161_s30] sm:$0xff]  ;;  %s326_s14 = sshll.u32 %s547_s13, 7 }
  0x50   : > { %198 = vrot.lane.b32.xlu0 %v196_v0, %s509_s29  ;;  %s195_s28 = scalar_lea.vmem [#allocation7], %s322_s6  ;;  %vm205_vm1 = vcmask 523264   ;;  %s219_s20 = scalar_lea.hbm %s722_s2, %s326_s14 }
  0x51   : > { %s221_s4 = sshll.u32 %s195_s28, 4  ;;  %s208_s24 = scalar_lea.sflag [#allocation4], %s672_s5  ;;  %s222_s4 = int_to_ptr.vmem [resolvable:$true] %s221_s4 }
  0x52   : > { %s437_s19 = scalar_lea.vmem %s222_s4, 128  ;;  %p735_p13 = scmp.ne.s32.totalorder %s727_s21, 0 }
  0x53   : > { %p438_p6 = scmp.ne.s32.totalorder %s222_s4, %s437_s19  ;;  %s510_s25 = smov [#allocation7]  }
  0x54   : > { %s441_s13 = sshll.u32 %s510_s25, 4  ;;  %s442_s13 = int_to_ptr.vmem [resolvable:$false] %s441_s13 }
  0x55   : > { %p439_p7 = pnand %p438_p6, %p735_p13  ;;  %s443_s23 = scalar_lea.vmem %s442_s13, 256 }
  0x56   : > { %p444_p10 = scmp.lt.s32.totalorder %s222_s4, %s442_s13  ;;  %p445_p2 = scmp.lt.s32.totalorder %s443_s23, %s437_s19 }
  0x57   : > { %p440_p8 = pneg %p439_p7 }
  0x58   : > { %p446_p4 = por %p445_p2, %p444_p10 }
  0x5a   : > { %p447_p5 = pnand %p446_p4, %p440_p8 }
  0xc2   : > { %v199_v2 = vpop.permute.xlu0 %198 }
  0xc3   : > { %v202_v3 = vsel %vm201_vm0, %v196_v0, %v199_v2 }
  0xc4   : > { %v204_v4 = vadd.f32 %v203_v1, %v202_v3 }
  0xc6   : > { %206 = vst.msk [vmem:[%s195_s28] sm:$0xff] %vm205_vm1, %v204_v4 }
  0xc7   : > { %450 = shalt.err (!%p447_p5)
}
  0xc8   : > { %s451_s26 = scalar_lea.hbm %s219_s20, 128  ;;  %s455_s6 = scalar_lea.hbm %s722_s2, 256 }
  0xc9   : > { %p452_p9 = scmp.ne.s32.totalorder %s219_s20, %s451_s26  ;;  %p456_p12 = scmp.lt.s32.totalorder %s219_s20, %s722_s2 }
  0xca   : > { %p457_p1 = scmp.lt.s32.totalorder %s455_s6, %s451_s26 }
  0xcb   : > { %p453_p0 = pnand %p452_p9, %p735_p13 }
  0xcc   : > { %p458_p3 = por %p457_p1, %p456_p12 }
  0xcd   : > { %p454_p11 = pneg %p453_p0 }
  0xcf   : > { %p459_p6 = pnand %p458_p3, %p454_p11 }
  0xd1   : > { %462 = shalt.err (!%p459_p6)
}
  0xd2   : > { %333 = dma.vmem_to_hbm [thread:$0]  (%p735_p13), %s222_s4, 128, %s219_s20, %s208_s24  }
  0xd3 PF: > { %s233_s3 = sand.u32 1, %s493_s9   ;;  %p736_p7 = scmp.ne.s32.totalorder %s728_s22, 0 }
  0xd4   : > { %p737_p8 = scmp.ge.s32.totalorder %s505_s12, 2  ;;  %s234_s7 = scalar_lea.sflag [#allocation4], %s233_s3 }
  0xd6   : > { %p343_p10 = pnand %p737_p8, %p736_p7 }
  0xd8   : > { %p344_p2 = pneg %p343_p10 }
  0xda   : > { %488 = dma.done.wait (%p344_p2), %s234_s7, 128  }
  0xdb   : > { %490 = vsyncadd (%p344_p2), %s234_s7, 4294967168  ;;  %p18_p4 = scmp.ge.s32.totalorder %s551_s15, 4   ;;  %s738_s9 = smov %s497_s10 }
  0xdc   : > { %s739_s10 = smov %s501_s11  ;;  %s740_s11 = smov %s563_s18 }
  0xdd   : > { %s741_s12 = smov %s551_s15  ;;  %20 = sbr.rel (!%p18_p4) target bundleno = 7 (0x7), region = 86 }
  0xe2   :  { %239 = vsyncpa [#allocation3], 1 }
  0xe3   :  { %241 = vsyncpa [#allocation3 + $0x1], 1 }
  0xe4   :  { %242 = vsyncpa [#allocation6], 1 }
  0xe5   :  { %244 = vsyncpa [#allocation6 + $0x1], 1 }
  0xe6   :  { %245 = vsyncpa [#allocation4], 1 }
  0xe7   :  { %247 = vsyncpa [#allocation4 + $0x1], 1 }

</bundles_post_ra>
